<compile_context>
chip_gen: v7x
topology: tpu7x:2x2x1
jax: 0.10.0
libtpu: 0.0.40
codegen_flags: <defaults>
</compile_context>

<pallas_src>
import jax
import jax.numpy as jnp
from jax.experimental import pallas as pl
from jax.experimental.pallas import tpu as pltpu

LEAK = 0.1
EPS = 1e-5
LANES = 128


# ------------------------------ fused pass kernel ----------------------------
def _conv_act_stats_kernel(p_ref, w_ref, act_ref, stats_ref):
    # p_ref:     (TM, K)      im2col patches (compute dtype)
    # w_ref:     (K, Cp)      conv weight (compute dtype), lane-padded only if wide
    # act_ref:   (TM, Cp)     LeakyReLU(conv) tile, stored in act dtype
    # stats_ref: (1, 8, Cp)   f32; rows 0/1 = per-tile per-channel [sum, sum_sq]
    acc = jnp.dot(p_ref[...], w_ref[...], preferred_element_type=jnp.float32)
    act = jnp.where(acc > 0, acc, LEAK * acc)
    act_ref[...] = act.astype(act_ref.dtype)
    # BN statistics always from the f32 accumulator (independent of act dtype).
    stats_ref[0, 0:1, :] = jnp.sum(act, axis=0, keepdims=True)
    stats_ref[0, 1:2, :] = jnp.sum(act * act, axis=0, keepdims=True)


# --------------------------------- wrapper -----------------------------------
def one_node_forward(x_nchw, weight_oihw, gamma, beta, *,
                     row_block=None, compute_dtype=jnp.float32, act_dtype=None):
    """Conv3x3(pad=1, no bias) -> LeakyReLU(0.1) -> BatchNorm2d (batch stats).

    compute_dtype: MXU input dtype (bf16 is valid on v5e/v6e/v7x; accumulation is
    f32). act_dtype: storage dtype of the activation intermediate (defaults to
    compute_dtype); BN statistics and the final affine stay in f32.
    """
    N, Cin, H, W = x_nchw.shape
    Cout = weight_oihw.shape[0]
    K = 9 * Cin
    M = N * H * W
    if act_dtype is None:
        act_dtype = compute_dtype
    in_bytes = jnp.dtype(compute_dtype).itemsize
    act_bytes = jnp.dtype(act_dtype).itemsize

    # Lane sizing: pad only wide layers up to a multiple of 128.
    Cp = Cout if Cout < LANES else ((Cout + LANES - 1) // LANES) * LANES

    # VMEM needed for 2-deep pipeline buffers of every operand at row block r.
    def tile_vmem_bytes(r):
        return (2 * r * K * in_bytes          # patches
                + 2 * K * Cp * in_bytes       # weight (resident, still 2 bufs)
                + 2 * r * Cp * act_bytes      # act output
                + 2 * 8 * Cp * 4)             # stats output

    if row_block is None:
        row_block = 1024
        budget = 24 * 1024 * 1024             # leaves headroom within v7x 64 MiB
        while row_block > 64 and tile_vmem_bytes(row_block) > budget:
            row_block //= 2
        # Keep >= 4 tiles so both v7x TensorCores get work on small shapes.
        while row_block > 64 and pl.cdiv(M, row_block) < 4:
            row_block //= 2
    sub = 16 if (in_bytes < 4 or act_bytes < 4) else 8
    assert row_block % sub == 0, f"row_block must be a multiple of {sub}"

    num_tiles = pl.cdiv(M, row_block)
    Mpad = num_tiles * row_block
    vmem_limit = int(min(60 << 20,
                         max(32 << 20, tile_vmem_bytes(row_block) + (8 << 20))))

    # NCHW -> NHWC, pad spatially, build im2col once (fused by XLA). Tap order
    # (kh, kw) row-major with channel fastest, matching the weight reshape below.
    x_nhwc = jnp.transpose(x_nchw, (0, 2, 3, 1)).astype(jnp.float32)
    xp = jnp.pad(x_nhwc, ((0, 0), (1, 1), (1, 1), (0, 0)))
    taps = [xp[:, dy:dy + H, dx:dx + W, :] for dy in range(3) for dx in range(3)]
    patches = jnp.concatenate(taps, axis=-1).reshape(M, K)
    if Mpad != M:
        # Zero rows are harmless: leaky(0 @ W) = 0 contributes nothing to the
        # partial sums, and statistics are divided by the true M below.
        patches = jnp.pad(patches, ((0, Mpad - M), (0, 0)))
    patches = patches.astype(compute_dtype)

    # (Cout, Cin, 3, 3) -> (kh, kw, Cin, Cout) -> (9*Cin, Cout) -> optional lane pad.
    w = jnp.transpose(weight_oihw, (2, 3, 1, 0)).reshape(K, Cout).astype(jnp.float32)
    if Cp != Cout:
        w = jnp.pad(w, ((0, 0), (0, Cp - Cout)))
    w = w.astype(compute_dtype)

    act, stats = pl.pallas_call(
        _conv_act_stats_kernel,
        grid=(num_tiles,),
        in_specs=[
            pl.BlockSpec((row_block, K), lambda i: (i, 0)),
            pl.BlockSpec((K, Cp), lambda i: (0, 0)),       # weight stays resident
        ],
        out_specs=(
            pl.BlockSpec((row_block, Cp), lambda i: (i, 0)),
            pl.BlockSpec((1, 8, Cp), lambda i: (i, 0, 0)),
        ),
        out_shape=(
            jax.ShapeDtypeStruct((Mpad, Cp), act_dtype),
            jax.ShapeDtypeStruct((num_tiles, 8, Cp), jnp.float32),
        ),
        compiler_params=pltpu.CompilerParams(
            dimension_semantics=("parallel",),
            vmem_limit_bytes=vmem_limit,
        ),
    )(patches, w)

    # BN batch statistics from the tiny per-tile partials (all f32).
    sums = jnp.sum(stats[:, 0, :Cout], axis=0)             # (Cout,)
    sqs = jnp.sum(stats[:, 1, :Cout], axis=0)              # (Cout,)
    mean = sums / M
    var = jnp.maximum(sqs / M - mean * mean, 0.0)           # biased batch variance
    scale = gamma.astype(jnp.float32) * jax.lax.rsqrt(var + EPS)
    shift = beta.astype(jnp.float32) - mean * scale

    # BN affine folded into the XLA epilogue that already slices / reshapes /
    # transposes back to NCHW: one read of act + one write of the output, and
    # no second full-tensor Pallas pass.
    out = act[:M, :Cout].astype(jnp.float32) * scale[None, :] + shift[None, :]
    out = out.reshape(N, H, W, Cout)
    return jnp.transpose(out, (0, 3, 1, 2))


# --------------------------------- reference ---------------------------------
def one_node_reference(x_nchw, weight_oihw, gamma, beta):
    out = jax.lax.conv_general_dilated(
        x_nchw.astype(jnp.float32), weight_oihw.astype(jnp.float32),
        window_strides=(1, 1), padding=((1, 1), (1, 1)),
        dimension_numbers=("NCHW", "OIHW", "NCHW"))
    out = jnp.where(out > 0, out, LEAK * out)
    mean = jnp.mean(out, axis=(0, 2, 3), keepdims=True)
    var = jnp.mean(jnp.square(out - mean), axis=(0, 2, 3), keepdims=True)
    out = (out - mean) * jax.lax.rsqrt(var + EPS)
    return out * gamma.reshape(1, -1, 1, 1) + beta.reshape(1, -1, 1, 1)


if __name__ == "__main__":
    N, Cin, Cout, H, W = 2, 4, 8, 16, 16

    key = jax.random.PRNGKey(0)
    kx, kw = jax.random.split(key)
    x = jax.random.normal(kx, (N, Cin, H, W), dtype=jnp.float32)
    fan_in = Cin * 3 * 3
    weight = jax.random.normal(kw, (Cout, Cin, 3, 3), dtype=jnp.float32) * (2.0 / fan_in) ** 0.5
    gamma = jnp.ones((Cout,), jnp.float32)
    beta = jnp.zeros((Cout,), jnp.float32)

    # f32 path (auto row_block -> 4 tiles here, exercises cross-tile BN reduction).
    out = jax.block_until_ready(one_node_forward(x, weight, gamma, beta))
    ref = jax.block_until_ready(one_node_reference(x, weight, gamma, beta))
    assert out.shape == (N, Cout, H, W)
    err = float(jnp.max(jnp.abs(out - ref)))
    assert jnp.allclose(out, ref, atol=1e-3, rtol=1e-3), err

    # bf16 MXU-input + bf16 act-storage path (valid on v5e/v6e/v7x). Compare
    # against a reference whose conv inputs are bf16-rounded; remaining error is
    # accumulation order + one bf16 rounding of the activation intermediate.
    out_bf = jax.block_until_ready(
        one_node_forward(x, weight, gamma, beta, compute_dtype=jnp.bfloat16))
    x_r = x.astype(jnp.bfloat16).astype(jnp.float32)
    w_r = weight.astype(jnp.bfloat16).astype(jnp.float32)
    ref_bf = jax.block_until_ready(one_node_reference(x_r, w_r, gamma, beta))
    err_bf = float(jnp.max(jnp.abs(out_bf - ref_bf)))
    assert jnp.allclose(out_bf, ref_bf, atol=3e-2, rtol=3e-2), err_bf

    print("KERNEL_OK")
</pallas_src>

<mosaic_0001>
module attributes {stable_mosaic.version = 11 : i64} {
  func.func @_conv_act_stats_kernel(%arg0: i32, %arg1: memref<128x36xf32, #tpu.memory_space<vmem>>, %arg2: memref<36x8xf32, #tpu.memory_space<vmem>>, %arg3: memref<128x8xf32, #tpu.memory_space<vmem>>, %arg4: memref<1x8x8xf32, #tpu.memory_space<vmem>>) attributes {dimension_semantics = [#tpu.dimension_semantics<parallel>], iteration_bounds = array<i64: 4>, scalar_prefetch = 0 : i64, scratch_operands = 0 : i64, tpu.core_type = #tpu.core_type<tc>, window_params = [{transform_indices = @transform_0, window_bounds = array<i64: 128, 36>}, {pipeline_mode = #tpu.pipeline_mode<synchronous>, transform_indices = @transform_1, window_bounds = array<i64: 36, 8>}, {transform_indices = @transform_2, window_bounds = array<i64: 128, 8>}, {transform_indices = @transform_3, window_bounds = array<i64: 1, 8, 8>}]} {
    %c0 = arith.constant 0 : index
    %c0_0 = arith.constant 0 : index
    %0 = vector.load %arg1[%c0, %c0_0] : memref<128x36xf32, #tpu.memory_space<vmem>>, vector<128x36xf32>
    %c0_1 = arith.constant 0 : index
    %c0_2 = arith.constant 0 : index
    %1 = vector.load %arg2[%c0_1, %c0_2] : memref<36x8xf32, #tpu.memory_space<vmem>>, vector<36x8xf32>
    %cst = arith.constant dense<0.000000e+00> : vector<128x8xf32>
    %2 = tpu.matmul %0, %1, %cst {dimension_numbers = #tpu.dot_dimension_numbers<[1], [0], [0], [1], [0, 0, 1, 1], [], []>} : vector<128x36xf32>, vector<36x8xf32>, vector<128x8xf32> -> vector<128x8xf32>
    %cst_3 = arith.constant 0.000000e+00 : f32
    %3 = vector.broadcast %cst_3 : f32 to vector<128x8xf32>
    %4 = arith.cmpf ogt, %2, %3 : vector<128x8xf32>
    %cst_4 = arith.constant 1.000000e-01 : f32
    %5 = vector.broadcast %cst_4 : f32 to vector<128x8xf32>
    %6 = arith.mulf %5, %2 : vector<128x8xf32>
    %7 = arith.select %4, %2, %6 : vector<128x8xi1>, vector<128x8xf32>
    %c0_5 = arith.constant 0 : index
    %c0_6 = arith.constant 0 : index
    %8 = vector.load %arg3[%c0_5, %c0_6] : memref<128x8xf32, #tpu.memory_space<vmem>>, vector<128x8xf32>
    tpu.vector_store %arg3[%c0_5, %c0_6], %7 {strides = array<i32>} : memref<128x8xf32, #tpu.memory_space<vmem>>, vector<128x8xf32>,
    %cst_7 = arith.constant dense<0.000000e+00> : vector<8xf32>
    %9 = vector.multi_reduction <add>, %7, %cst_7 [0] : vector<128x8xf32> to vector<8xf32>
    %10 = vector.shape_cast %9 : vector<8xf32> to vector<1x8xf32>
    %c0_8 = arith.constant 0 : index
    %c0_9 = arith.constant 0 : index
    %c0_10 = arith.constant 0 : index
    %11 = vector.load %arg4[%c0_8, %c0_9, %c0_10] : memref<1x8x8xf32, #tpu.memory_space<vmem>>, vector<1x1x8xf32>
    %12 = vector.shape_cast %11 : vector<1x1x8xf32> to vector<1x8xf32>
    %13 = vector.shape_cast %10 : vector<1x8xf32> to vector<1x1x8xf32>
    tpu.vector_store %arg4[%c0_8, %c0_9, %c0_10], %13 {strides = array<i32>} : memref<1x8x8xf32, #tpu.memory_space<vmem>>, vector<1x1x8xf32>,
    %14 = arith.mulf %7, %7 : vector<128x8xf32>
    %cst_11 = arith.constant dense<0.000000e+00> : vector<8xf32>
    %15 = vector.multi_reduction <add>, %14, %cst_11 [0] : vector<128x8xf32> to vector<8xf32>
    %16 = vector.shape_cast %15 : vector<8xf32> to vector<1x8xf32>
    %c0_12 = arith.constant 0 : index
    %c1 = arith.constant 1 : index
    %c0_13 = arith.constant 0 : index
    %17 = vector.load %arg4[%c0_12, %c1, %c0_13] : memref<1x8x8xf32, #tpu.memory_space<vmem>>, vector<1x1x8xf32>
    %18 = vector.shape_cast %17 : vector<1x1x8xf32> to vector<1x8xf32>
    %19 = vector.shape_cast %16 : vector<1x8xf32> to vector<1x1x8xf32>
    tpu.vector_store %arg4[%c0_12, %c1, %c0_13], %19 {strides = array<i32>} : memref<1x8x8xf32, #tpu.memory_space<vmem>>, vector<1x1x8xf32>,
    return
  }
  func.func @transform_0(%arg0: i32) -> (i32, i32) {
    %c0_i32 = arith.constant 0 : i32
    %c0_i32_0 = arith.constant 0 : i32
    return %arg0, %c0_i32 : i32, i32
  }
  func.func @transform_1(%arg0: i32) -> (i32, i32) {
    %c0_i32 = arith.constant 0 : i32
    %c0_i32_0 = arith.constant 0 : i32
    %c0_i32_1 = arith.constant 0 : i32
    return %c0_i32, %c0_i32_0 : i32, i32
  }
  func.func @transform_2(%arg0: i32) -> (i32, i32) {
    %c0_i32 = arith.constant 0 : i32
    %c0_i32_0 = arith.constant 0 : i32
    return %arg0, %c0_i32 : i32, i32
  }
  func.func @transform_3(%arg0: i32) -> (i32, i32, i32) {
    %c0_i32 = arith.constant 0 : i32
    %c0_i32_0 = arith.constant 0 : i32
    %c0_i32_1 = arith.constant 0 : i32
    return %arg0, %c0_i32, %c0_i32_0 : i32, i32, i32
  }
}

</mosaic_0001>

<bundles_post_ra>
// kernel: tpu_custom_call.1
= control target key start
LH: loop header
LB: loop body
LE: loop exit
PB: predicated region body
PF: predicated region fallthrough
CT: control target
= control target key end

     0   :  { %9 = vsyncpa [#allocation3], 0  ;;  %s1163_s0 = inlined_call_operand.vmem [shape: f32[512,36], index: 0, kind: input, shape index: {}]   ;;  %s1164_s1 = inlined_call_operand.vmem [shape: f32[36,8], index: 1, kind: input, shape index: {}]   ;;  %s1165_s2 = inlined_call_operand.vmem [shape: f32[512,8], index: 2, kind: output, shape index: {0}]   ;;  %s1166_s3 = inlined_call_operand.hbm [shape: f32[4,8,8], index: 3, kind: output, shape index: {1}]  }
   0x1   :  { %11 = vsyncpa [#allocation3 + $0x1], 0  ;;  %s892_s12 = smov 0   ;;  %s894_s13 = smov 0  }
   0x2   :  { %s896_s14 = smov 0   ;;  %s898_s15 = smov 0  }
   0x3 LB: > { %s913_s16 = sadd.s32 4294967295, %s869_s15   ;;  %s669_s17 = sadd.s32 4294967294, %s869_s15   ;;  %s869_s15 = sphi %s898_s15, %s1172_s15   ;;  %s865_s14 = sphi %s896_s14, %s1171_s14   ;;  %s861_s13 = sphi %s894_s13, %s1170_s13   ;;  %s857_s12 = sphi %s892_s12, %s1169_s12  }
   0x4   : > { %s917_s18 = sadd.s32 1, %s869_s15   ;;  %s97_s19 = sadd.s32 1, %s865_s14 }
   0x5   : > { %s94_s20 = ssub.s32 %s869_s15, %s917_s18  ;;  %p107_p0 = scmp.ne.s32.totalorder %s865_s14, %s861_s13 }
   0x6   : > { %p95_p1 = scmp.eq.s32.totalorder %s94_s20, 0  ;;  %p108_p2 = scmp.eq.s32.totalorder %s913_s16, 3 }
   0x7   : > { %p113_p3 = scmp.ne.s32.totalorder %s861_s13, %s857_s12  ;;  %p114_p4 = scmp.eq.s32.totalorder %s669_s17, 3 }
   0x8   : > { %s928_s21 = scalar_select %p95_p1, %s865_s14, %s97_s19  }
   0x9   : > { %p930_p5 = por %p108_p2, %p107_p0  ;;  %p934_p6 = por %p114_p4, %p113_p3 }
   0xa   : > { %p672_p7 = scmp.ge.s32.totalorder %s869_s15, 1  ;;  %p144_p8 = scmp.lt.s32.totalorder %s869_s15, 5 }
   0xc   : > { %p145_p9 = pnand %p672_p7, %p144_p8 }
   0xd   : > { %v201_v0 = vld [vmem:[%s1164_s1] sm:$0xff] (!%p145_p9)  ;;  %v202_v1 = vld [vmem:[%s1164_s1 + $0x8] sm:$0xff] (!%p145_p9)  ;;  %v203_v2 = vld [vmem:[%s1164_s1 + $0x10] sm:$0xff] (!%p145_p9)  ;;  %s674_s30 = sshll.u32 (!%p145_p9), %s913_s16, 4  ;;  %vm206_vm0 = vcmask (!%p145_p9), 293888   ;;  %vm255_vm1 = vcmask (!%p145_p9), 1043456  }
   0xe   : > { %148 = sbr.rel (%p145_p9) target bundleno = 304 (0x130), region = 28  ;;  %v754_v3 = vpack.c.bf16 (!%p145_p9), %v202_v1, %v201_v0  ;;  %v204_v4 = vld [vmem:[%s1164_s1 + $0x18] sm:$0xff] (!%p145_p9)  ;;  %p174_p10 = scmp.lt.s32.totalorder (!%p145_p9), %s674_s30, 63  ;;  %v205_v6 = vld [vmem:[%s1164_s1 + $0x20] sm:$0xf] (!%p145_p9)  ;;  %vm452_vm3 = vcmask (!%p145_p9), 64512  }
   0xf   : > { %v758_v5 = vpack.c.bf16 (!%p145_p9), %v204_v4, %v203_v2  ;;  %s170_s24 = sand.u32 (!%p145_p9), 1, %s861_s13   ;;  %s696_s26 = sshll.u32 (!%p145_p9), %s913_s16, 7 }
  0x10   : > { %755 = vmatprep.subr.bf16.mxu0 (!%p145_p9), %v754_v3  ;;  %762 = vmatprep.subr.bf16.mxu1 (!%p145_p9), %v754_v3  ;;  %s673_s25 = sshll.u32 (!%p145_p9), %s170_s24, 3  ;;  %s1121_s4 = scalar_lea.hbm (!%p145_p9), %s1166_s3, %s696_s26 }
  0x11   : > { %757 = vmatpush3.bf16.msra.mxu0 (!%p145_p9), %v754_v3  ;;  %765 = vmatpush3.bf16.msra.mxu1 (!%p145_p9), %v754_v3  ;;  %s172_s27 = scalar_lea.vmem (!%p145_p9), [#allocation2], %s673_s25  ;;  %s568_s5 = scalar_lea.sflag (!%p145_p9), [#allocation3], %s170_s24 }
  0x12   : > { %759 = vmatprep.subr.bf16.mxu0 (!%p145_p9), %v758_v5  ;;  %763 = vmatprep.subr.bf16.mxu1 (!%p145_p9), %v758_v5  ;;  %s585_s28 = sshll.u32 (!%p145_p9), %s172_s27, 4  ;;  %s871_s16 = smov (!%p145_p9), [#allocation2]   ;;  %s1123_s28 = int_to_ptr.vmem [resolvable:$true] %s585_s28 }
  0x13   : > { %s811_s7 = sshll.u32 (!%p145_p9), %s871_s16, 4  ;;  %s812_s7 = int_to_ptr.vmem [resolvable:$false] %s811_s7 }
  0x14   : > { %s813_s8 = scalar_lea.vmem (!%p145_p9), %s812_s7, 256  ;;  %p814_p0 = scmp.lt.s32.totalorder (!%p145_p9), %s1123_s28, %s812_s7 }
  0x15   : > { %s1174_s30 = smov (!%p174_p10, %s674_s30), 63  ;;  %761 = vmatpush3.bf16.msra.mxu0 %v758_v5  ;;  %766 = vmatpush3.bf16.msra.mxu1 %v758_v5 }
  0x16   : > { %s675_s6 = sshll.u32 %s1174_s30, 3  ;;  %728 = vmatprep.subr.msk.mxu0 %vm255_vm1, %v205_v6  ;;  %764 = vmatprep.subr.msk.mxu1 %vm255_vm1, %v205_v6 }
  0x17   : > { %s964_s11 = scalar_lea.vmem %s1163_s0, %s675_s6  ;;  %s1007_s20 = scalar_lea.vmem %s1165_s2, %s675_s6 }
  0x18   : > { %v185_v7 = vld [vmem:[%s964_s11] sm:$0xff]  ;;  %v186_v9 = vld [vmem:[%s964_s11 + $0x8] sm:$0xff]  ;;  %v187_v10 = vld [vmem:[%s964_s11 + $0x10] sm:$0xff]  ;;  %s807_s6 = scalar_lea.vmem %s1123_s28, 128 }
  0x19   : > { %730 = vmatprep.mubr.msk.f32.mxu0 %vm206_vm0, %v185_v7  ;;  %v193_v8 = vld [vmem:[%s964_s11 + $0x40] sm:$0xff]  ;;  %v194_v11 = vld [vmem:[%s964_s11 + $0x48] sm:$0xff]  ;;  %729 = vmatpush3.msk.msra.mxu0 %vm255_vm1, %v205_v6  ;;  %v195_v12 = vld [vmem:[%s964_s11 + $0x50] sm:$0xff]  ;;  %p808_p11 = scmp.ne.s32.totalorder %s1123_s28, %s807_s6  ;;  %p815_p1 = scmp.lt.s32.totalorder %s813_s8, %s807_s6 }
  0x1a   : > { %742 = vmatprep.mubr.msk.f32.mxu1 %vm206_vm0, %v193_v8  ;;  %731 = vmatmul.mubr.msk.f32.vlgmr.msra.gmra.mrb[0].mxu0 %vm206_vm0, %v186_v9  ;;  %v188_v13 = vld [vmem:[%s964_s11 + $0x18] sm:$0xff]  ;;  %v189_v14 = vld [vmem:[%s964_s11 + $0x20] sm:$0xff]  ;;  %v190_v17 = vld [vmem:[%s964_s11 + $0x28] sm:$0xff] }
  0x1b   : > { %767 = vmatpush3.msk.msra.mxu1 %vm255_vm1, %v205_v6  ;;  %733 = vmatprep.mubr.msk.f32.mxu0 %vm206_vm0, %v187_v10  ;;  %v196_v15 = vld [vmem:[%s964_s11 + $0x58] sm:$0xff]  ;;  %v197_v16 = vld [vmem:[%s964_s11 + $0x60] sm:$0xff]  ;;  %v191_v18 = vld [vmem:[%s964_s11 + $0x30] sm:$0xff]  ;;  %p809_p12 = pnand %p808_p11, %p930_p5  ;;  %p816_p2 = por %p815_p1, %p814_p0 }
  0x1c   : > { %743 = vmatmul.mubr.msk.f32.vlgmr.msra.gmra.mrb[0].mxu1 %vm206_vm0, %v194_v11  ;;  %v198_v19 = vld [vmem:[%s964_s11 + $0x68] sm:$0xff]  ;;  %v199_v20 = vld [vmem:[%s964_s11 + $0x70] sm:$0xff]  ;;  %v192_v21 = vld [vmem:[%s964_s11 + $0x38] sm:$0xff] }
  0x1d   : > { %745 = vmatprep.mubr.msk.f32.mxu1 %vm206_vm0, %v195_v12  ;;  %v200_v22 = vld [vmem:[%s964_s11 + $0x78] sm:$0xff]  ;;  %p810_p13 = pneg %p809_p12 }
  0x1e   : > { %734 = vmatmul.mubr.msk.f32.gmra.mrb[2].mxu0 %vm206_vm0, %v188_v13 }
  0x1f   : > { %736 = vmatprep.mubr.msk.f32.mxu0 %vm206_vm0, %v189_v14  ;;  %p817_p3 = pnand %p816_p2, %p810_p13 }
  0x20   : > { %746 = vmatmul.mubr.msk.f32.gmra.mrb[2].mxu1 %vm206_vm0, %v196_v15 }
  0x21   : > { %748 = vmatprep.mubr.msk.f32.mxu1 %vm206_vm0, %v197_v16 }
  0x22   : > { %737 = vmatmul.mubr.msk.f32.gmra.mrb[4].mxu0 %vm206_vm0, %v190_v17 }
  0x23   : > { %739 = vmatprep.mubr.msk.f32.mxu0 %vm206_vm0, %v191_v18 }
  0x24   : > { %749 = vmatmul.mubr.msk.f32.gmra.mrb[4].mxu1 %vm206_vm0, %v198_v19 }
  0x25   : > { %751 = vmatprep.mubr.msk.f32.mxu1 %vm206_vm0, %v199_v20 }
  0x26   : > { %740 = vmatmul.mubr.msk.f32.gmra.mrb[6].mxu0 %vm206_vm0, %v192_v21 }
  0x28   : > { %752 = vmatmul.mubr.msk.f32.gmra.mrb[6].mxu1 %vm206_vm0, %v200_v22 }
  0xed   : > { %v732_v23 = vpop.f32.mrb[0].mxu0 }
  0xee   : > { %vm405_vm2 = vcmp.gt.f32.partialorder %v732_v23, 0.0  ;;  %v421_v24 = vmul.f32 0.1, %v732_v23  ;;  %v325_v25 = vpop.f32.mrb[1].mxu0 }
  0xef   : > { %v744_v26 = vpop.f32.mrb[0].mxu1  ;;  %vm404_vm4 = vcmp.gt.f32.partialorder %v325_v25, 0.0  ;;  %v420_v27 = vmul.f32 0.1, %v325_v25 }
  0xf0   : > { %vm413_vm5 = vcmp.gt.f32.partialorder %v744_v26, 0.0  ;;  %v429_v28 = vmul.f32 0.1, %v744_v26  ;;  %v437_v29 = vsel %vm405_vm2, %v732_v23, %v421_v24  ;;  %v1009_v30 = vpop.f32.mrb[1].mxu1 }
  0xf1   : > { %454 = vst.msk [vmem:[%s1007_s20 + $0x8] sm:$0xff] %vm452_vm3, %v437_v29  ;;  %v470_v31 = vsel %vm452_vm3, %v437_v29, 0.0  ;;  %v509_v32 = vmul.f32 %v437_v29, %v437_v29  ;;  %v436_v33 = vsel %vm404_vm4, %v325_v25, %v420_v27  ;;  %v735_v34 = vpop.f32.mrb[2].mxu0  ;;  %vm412_vm10 = vcmp.gt.f32.partialorder %v1009_v30, 0.0 }
  0xf2   : > { %v1014_v35 = vsel %vm413_vm5, %v744_v26, %v429_v28  ;;  %453 = vst.msk [vmem:[%s1007_s20] sm:$0xff] %vm452_vm3, %v436_v33  ;;  %v469_v36 = vsel %vm452_vm3, %v436_v33, 0.0  ;;  %v508_v37 = vmul.f32 %v436_v33, %v436_v33  ;;  %vm407_vm6 = vcmp.gt.f32.partialorder %v735_v34, 0.0  ;;  %v335_v39 = vpop.f32.mrb[3].mxu0 }
  0xf3   : > { %v423_v38 = vmul.f32 0.1, %v735_v34  ;;  %462 = vst.msk [vmem:[%s1007_s20 + $0x48] sm:$0xff] %vm452_vm3, %v1014_v35  ;;  %v1022_v40 = vpop.f32.mrb[2].mxu1  ;;  %v525_v41 = vsel %vm452_vm3, %v509_v32, 0.0  ;;  %v471_v42 = vadd.f32 %v470_v31, %v469_v36  ;;  %vm406_vm7 = vcmp.gt.f32.partialorder %v335_v39, 0.0 }
  0xf4   : > { %v422_v43 = vmul.f32 0.1, %v335_v39  ;;  %v1025_v44 = vpop.f32.mrb[3].mxu1  ;;  %v524_v45 = vsel %vm452_vm3, %v508_v37, 0.0  ;;  %v428_v15 = vmul.f32 0.1, %v1009_v30 }
  0xf5   : > { %v439_v46 = vsel %vm407_vm6, %v735_v34, %v423_v38  ;;  %v526_v47 = vadd.f32 %v525_v41, %v524_v45  ;;  %v738_v50 = vpop.f32.mrb[4].mxu0  ;;  %v431_v19 = vmul.f32 0.1, %v1022_v40  ;;  %vm415_vm13 = vcmp.gt.f32.partialorder %v1022_v40, 0.0 }
  0xf6   : > { %456 = vst.msk [vmem:[%s1007_s20 + $0x18] sm:$0xff] %vm452_vm3, %v439_v46  ;;  %v511_v48 = vmul.f32 %v439_v46, %v439_v46  ;;  %v438_v49 = vsel %vm406_vm7, %v335_v39, %v422_v43  ;;  %vm409_vm8 = vcmp.gt.f32.partialorder %v738_v50, 0.0  ;;  %v425_v53 = vmul.f32 0.1, %v738_v50  ;;  %v345_v54 = vpop.f32.mrb[5].mxu0 }
  0xf7   : > { %455 = vst.msk [vmem:[%s1007_s20 + $0x10] sm:$0xff] %vm452_vm3, %v438_v49  ;;  %v472_v51 = vsel %vm452_vm3, %v438_v49, 0.0  ;;  %v510_v52 = vmul.f32 %v438_v49, %v438_v49  ;;  %v1033_v55 = vpop.f32.mrb[4].mxu1  ;;  %vm408_vm9 = vcmp.gt.f32.partialorder %v345_v54, 0.0  ;;  %v424_v57 = vmul.f32 0.1, %v345_v54 }
  0xf8   : > { %v473_v56 = vadd.f32 %v472_v51, %v471_v42  ;;  %v1035_v58 = vpop.f32.mrb[5].mxu1  ;;  %v474_v59 = vsel %vm452_vm3, %v439_v46, 0.0  ;;  %v529_v60 = vsel %vm452_vm3, %v511_v48, 0.0  ;;  %v441_v62 = vsel %vm409_vm8, %v738_v50, %v425_v53 }
  0xf9   : > { %v527_v61 = vsel %vm452_vm3, %v510_v52, 0.0  ;;  %458 = vst.msk [vmem:[%s1007_s20 + $0x28] sm:$0xff] %vm452_vm3, %v441_v62  ;;  %v513_v0 = vmul.f32 %v441_v62, %v441_v62  ;;  %v440_v1 = vsel %vm408_vm9, %v345_v54, %v424_v57  ;;  %v741_v2 = vpop.f32.mrb[6].mxu0  ;;  %v478_v8 = vsel %vm452_vm3, %v441_v62, 0.0 }
  0xfa   : > { %v528_v63 = vadd.f32 %v527_v61, %v526_v47  ;;  %457 = vst.msk [vmem:[%s1007_s20 + $0x20] sm:$0xff] %vm452_vm3, %v440_v1  ;;  %v475_v3 = vadd.f32 %v474_v59, %v473_v56  ;;  %v476_v4 = vsel %vm452_vm3, %v440_v1, 0.0  ;;  %v512_v5 = vmul.f32 %v440_v1, %v440_v1  ;;  %v355_v6 = vpop.f32.mrb[7].mxu0 }
  0xfb   : > { %vm411_vm11 = vcmp.gt.f32.partialorder %v741_v2, 0.0  ;;  %v1046_v7 = vpop.f32.mrb[6].mxu1  ;;  %v427_v10 = vmul.f32 0.1, %v741_v2  ;;  %vm410_vm12 = vcmp.gt.f32.partialorder %v355_v6, 0.0  ;;  %v533_v16 = vsel %vm452_vm3, %v513_v0, 0.0 }
  0xfc   : > { %v530_v9 = vadd.f32 %v529_v60, %v528_v63  ;;  %v1049_v11 = vpop.f32.mrb[7].mxu1  ;;  %v477_v12 = vadd.f32 %v476_v4, %v475_v3  ;;  %v531_v13 = vsel %vm452_vm3, %v512_v5, 0.0  ;;  %v426_v14 = vmul.f32 0.1, %v355_v6 }
  0xfd   : > { %v443_v18 = vsel %vm411_vm11, %v741_v2, %v427_v10  ;;  %v444_v26 = vsel %vm412_vm10, %v1009_v30, %v428_v15  ;;  %v447_v32 = vsel %vm415_vm13, %v1022_v40, %v431_v19  ;;  %vm414_vm14 = vcmp.gt.f32.partialorder %v1025_v44, 0.0 }
  0xfe   : > { %v532_v17 = vadd.f32 %v531_v13, %v530_v9  ;;  %460 = vst.msk [vmem:[%s1007_s20 + $0x38] sm:$0xff] %vm452_vm3, %v443_v18  ;;  %v515_v20 = vmul.f32 %v443_v18, %v443_v18  ;;  %v442_v21 = vsel %vm410_vm12, %v355_v6, %v426_v14  ;;  %v479_v22 = vadd.f32 %v478_v8, %v477_v12 }
  0xff   : > { %459 = vst.msk [vmem:[%s1007_s20 + $0x30] sm:$0xff] %vm452_vm3, %v442_v21  ;;  %v480_v23 = vsel %vm452_vm3, %v442_v21, 0.0  ;;  %v514_v24 = vmul.f32 %v442_v21, %v442_v21  ;;  %v482_v27 = vsel %vm452_vm3, %v443_v18, 0.0  ;;  %461 = vst.msk [vmem:[%s1007_s20 + $0x40] sm:$0xff] %vm452_vm3, %v444_v26  ;;  %v516_v29 = vmul.f32 %v444_v26, %v444_v26 }
 0x100   : > { %v534_v25 = vadd.f32 %v533_v16, %v532_v17  ;;  %v481_v28 = vadd.f32 %v480_v23, %v479_v22  ;;  %v430_v33 = vmul.f32 0.1, %v1025_v44  ;;  %v537_v34 = vsel %vm452_vm3, %v515_v20, 0.0  ;;  %464 = vst.msk [vmem:[%s1007_s20 + $0x58] sm:$0xff] %vm452_vm3, %v447_v32 }
 0x101   : > { %v535_v31 = vsel %vm452_vm3, %v514_v24, 0.0  ;;  %v517_v30 = vmul.f32 %v1014_v35, %v1014_v35  ;;  %v484_v38 = vsel %vm452_vm3, %v444_v26, 0.0  ;;  %vm417_vm15 = vcmp.gt.f32.partialorder %v1033_v55, 0.0 }
 0x102   : > { %v483_v36 = vadd.f32 %v482_v27, %v481_v28  ;;  %v536_v37 = vadd.f32 %v535_v31, %v534_v25  ;;  %v446_v39 = vsel %vm414_vm14, %v1025_v44, %v430_v33  ;;  %v433_v40 = vmul.f32 0.1, %v1033_v55 }
 0x103   : > { %v486_v42 = vsel %vm452_vm3, %v1014_v35, 0.0  ;;  %463 = vst.msk [vmem:[%s1007_s20 + $0x50] sm:$0xff] %vm452_vm3, %v446_v39  ;;  %v518_v45 = vmul.f32 %v446_v39, %v446_v39  ;;  %v539_v46 = vsel %vm452_vm3, %v516_v29, 0.0  ;;  %vm416_vm0 = vcmp.gt.f32.partialorder %v1035_v58, 0.0 }
 0x104   : > { %v538_v41 = vadd.f32 %v537_v34, %v536_v37  ;;  %v485_v43 = vadd.f32 %v484_v38, %v483_v36  ;;  %v449_v47 = vsel %vm417_vm15, %v1033_v55, %v433_v40  ;;  %v432_v44 = vmul.f32 0.1, %v1035_v58 }
 0x105   : > { %v541_v48 = vsel %vm452_vm3, %v517_v30, 0.0  ;;  %v519_v50 = vmul.f32 %v447_v32, %v447_v32  ;;  %466 = vst.msk [vmem:[%s1007_s20 + $0x68] sm:$0xff] %vm452_vm3, %v449_v47  ;;  %v488_v35 = vsel %vm452_vm3, %v446_v39, 0.0  ;;  %vm419_vm1 = vcmp.gt.f32.partialorder %v1046_v7, 0.0 }
 0x106   : > { %v540_v49 = vadd.f32 %v539_v46, %v538_v41  ;;  %v487_v51 = vadd.f32 %v486_v42, %v485_v43  ;;  %v448_v52 = vsel %vm416_vm0, %v1035_v58, %v432_v44  ;;  %v435_v53 = vmul.f32 0.1, %v1046_v7 }
 0x107   : > { %v490_v54 = vsel %vm452_vm3, %v447_v32, 0.0  ;;  %v543_v57 = vsel %vm452_vm3, %v518_v45, 0.0  ;;  %465 = vst.msk [vmem:[%s1007_s20 + $0x60] sm:$0xff] %vm452_vm3, %v448_v52  ;;  %v520_v59 = vmul.f32 %v448_v52, %v448_v52  ;;  %vm418_vm2 = vcmp.gt.f32.partialorder %v1049_v11, 0.0 }
 0x108   : > { %v489_v55 = vadd.f32 %v488_v35, %v487_v51  ;;  %v542_v56 = vadd.f32 %v541_v48, %v540_v49  ;;  %v451_v60 = vsel %vm419_vm1, %v1046_v7, %v435_v53  ;;  %v434_v58 = vmul.f32 0.1, %v1049_v11 }
 0x109   : > { %468 = vst.msk [vmem:[%s1007_s20 + $0x78] sm:$0xff] %vm452_vm3, %v451_v60  ;;  %v545_v63 = vsel %vm452_vm3, %v519_v50, 0.0  ;;  %v521_v0 = vmul.f32 %v449_v47, %v449_v47  ;;  %v492_v1 = vsel %vm452_vm3, %v448_v52, 0.0  ;;  %v494_v5 = vsel %vm452_vm3, %v449_v47, 0.0 }
 0x10a   : > { %v544_v61 = vadd.f32 %v543_v57, %v542_v56  ;;  %v491_v62 = vadd.f32 %v490_v54, %v489_v55  ;;  %v450_v2 = vsel %vm418_vm2, %v1049_v11, %v434_v58  ;;  %v547_v6 = vsel %vm452_vm3, %v520_v59, 0.0 }
 0x10b   : > { %467 = vst.msk [vmem:[%s1007_s20 + $0x70] sm:$0xff] %vm452_vm3, %v450_v2  ;;  %v522_v7 = vmul.f32 %v450_v2, %v450_v2  ;;  %v549_v10 = vsel %vm452_vm3, %v521_v0, 0.0  ;;  %v523_v12 = vmul.f32 %v451_v60, %v451_v60  ;;  %v496_v13 = vsel %vm452_vm3, %v450_v2, 0.0 }
 0x10c   : > { %v493_v3 = vadd.f32 %v492_v1, %v491_v62  ;;  %v546_v4 = vadd.f32 %v545_v63, %v544_v61  ;;  %v498_v11 = vsel %vm452_vm3, %v451_v60, 0.0  ;;  %vm506_vm4 = vcmask 57344  }
 0x10d   : > { %v551_v16 = vsel %vm452_vm3, %v522_v7, 0.0  ;;  %v553_v19 = vsel %vm452_vm3, %v523_v12, 0.0 }
 0x10e   : > { %v548_v8 = vadd.f32 %v547_v6, %v546_v4  ;;  %v495_v9 = vadd.f32 %v494_v5, %v493_v3 }
 0x110   : > { %v497_v14 = vadd.f32 %v496_v13, %v495_v9  ;;  %v550_v15 = vadd.f32 %v549_v10, %v548_v8 }
 0x112   : > { %v499_v17 = vadd.f32 %v498_v11, %v497_v14  ;;  %v552_v18 = vadd.f32 %v551_v16, %v550_v15 }
 0x114   : > { %v500_v20 = vrot.slane %v499_v17, 4  ;;  %v554_v21 = vadd.f32 %v553_v19, %v552_v18 }
 0x116   : > { %v501_v22 = vadd.f32 %v500_v20, %v499_v17  ;;  %v555_v23 = vrot.slane %v554_v21, 4 }
 0x118   : > { %v502_v24 = vrot.slane %v501_v22, 2  ;;  %v556_v25 = vadd.f32 %v555_v23, %v554_v21 }
 0x11a   : > { %v503_v26 = vadd.f32 %v502_v24, %v501_v22  ;;  %v557_v27 = vrot.slane %v556_v25, 2 }
 0x11c   : > { %v504_v28 = vrot.slane %v503_v26, 1  ;;  %v558_v29 = vadd.f32 %v557_v27, %v556_v25 }
 0x11e   : > { %v505_v31 = vadd.f32 %v504_v28, %v503_v26  ;;  %v559_v32 = vrot.slane %v558_v29, 1 }
 0x120   : > { %507 = vst.msk [vmem:[%s172_s27] sm:$0x1] %vm506_vm4, %v505_v31  ;;  %v560_v33 = vadd.f32 %v559_v32, %v558_v29 }
 0x122   : > { %561 = vst.msk [vmem:[%s172_s27 + $0x1] sm:$0x1] %vm506_vm4, %v560_v33 }
 0x123   : > { %820 = shalt.err (!%p817_p3)
}
 0x124   : > { %s821_s9 = scalar_lea.hbm %s1121_s4, 128  ;;  %s825_s17 = scalar_lea.hbm %s1166_s3, 512 }
 0x125   : > { %p822_p4 = scmp.ne.s32.totalorder %s1121_s4, %s821_s9  ;;  %p826_p9 = scmp.lt.u32.totalorder %s1121_s4, %s1166_s3 }
 0x126   : > { %p827_p10 = scmp.lt.u32.totalorder %s825_s17, %s821_s9  ;;  %p829_p12 = scmp.lt.u32.totalorder %s821_s9, %s1121_s4 }
 0x127   : > { %p823_p7 = pnand %p822_p4, %p930_p5 }
 0x128   : > { %p828_p11 = por %p827_p10, %p826_p9 }
 0x129   : > { %p824_p8 = pneg %p823_p7 }
 0x12a   : > { %p830_p13 = por %p829_p12, %p828_p11 }
 0x12c   : > { %p831_p0 = pnand %p830_p13, %p824_p8 }
 0x12e   : > { %834 = shalt.err (!%p831_p0)
}
 0x12f   : > { %768 = dma.vmem_to_hbm [thread:$0]  (%p930_p5), %s1123_s28, 128, %s1121_s4, %s568_s5  }
 0x130 PF: > { %p774_p1 = scmp.ge.s32.totalorder %s869_s15, 2  ;;  %s605_s24 = sand.u32 1, %s857_s12  }
 0x131   : > { %s606_s25 = scalar_lea.sflag [#allocation3], %s605_s24 }
 0x132   : > { %p771_p2 = pnand %p774_p1, %p934_p6 }
 0x134   : > { %852 = dma.done.wait (!%p771_p2), %s606_s25, 128  }
 0x135   : > { %854 = vsyncadd (!%p771_p2), %s606_s25, 4294967168  ;;  %p14_p3 = scmp.ge.s32.totalorder %s917_s18, 6   ;;  %s1169_s12 = smov %s861_s13 }
 0x136   : > { %s1170_s13 = smov %s865_s14  ;;  %s1171_s14 = smov %s928_s21 }
 0x137   : > { %s1172_s15 = smov %s917_s18  ;;  %16 = sbr.rel (!%p14_p3) target bundleno = 3 (0x3), region = 75 }
 0x13e   :  { %611 = vsyncpa [#allocation3], 1 }
 0x13f   :  { %613 = vsyncpa [#allocation3 + $0x1], 1 }

</bundles_post_ra>
